<compile_context>
chip_gen: v7x
topology: tpu7x:2x2x1
jax: 0.10.0
libtpu: 0.0.40
codegen_flags: <defaults>
</compile_context>

<pallas_src>
import jax
import jax.numpy as jnp
from jax.experimental import pallas as pl
from jax.experimental.pallas import tpu as pltpu

LANE = 128


def _finalc_kernel(e_ref, x_ref, o_ref):
    # e_ref: (2*B,) f32 in SMEM (scalar prefetch): [scale_0, shift_0, scale_1, ...]
    # x_ref: VMEM tile of the current batch's volume (rank-2 tile).
    # o_ref: (num_outputs, *x_ref.shape) VMEM tile: all repeat copies at once.
    b = pl.program_id(0)
    scale = e_ref[2 * b]
    shift = e_ref[2 * b + 1]
    res = (x_ref[...].astype(jnp.float32) * scale + shift).astype(o_ref.dtype)
    for n in range(o_ref.shape[0]):          # num_outputs: small & static
        o_ref[n] = res


def finalc_embedding(x, z_prjs, w_lin, b_lin, *, num_outputs=1,
                     vmem_block_budget=16 * 2**20):
    """Forward of FinalC_Embeding_Layer.

    x:      (B, C, D, H, W), any float dtype (streamed / dtype preserved).
    z_prjs: (B, 5)
    w_lin:  (2, 5)  nn.Linear(5, 2).weight
    b_lin:  (2,)    nn.Linear(5, 2).bias
    returns (B, C * num_outputs, D, H, W) with x.dtype
    """
    B, C, D, H, W = x.shape
    dtype = x.dtype
    itemsize = jnp.dtype(dtype).itemsize
    S0 = C * D * H * W
    sub = max(8, 32 // itemsize)     # sublane packing: 8 f32 / 16 bf16 / 32 i8

    # Tiny embedding MLP (B,5)@(5,2): negligible glue, computed in plain JAX
    # and scalar-prefetched to SMEM so the kernel body is only the FMA.
    z = z_prjs.astype(jnp.float32)
    e = (z * jax.nn.sigmoid(z)) @ w_lin.astype(jnp.float32).T \
        + b_lin.astype(jnp.float32)                                   # (B, 2)
    e_flat = e.reshape(-1)                                            # (2*B,)

    cost = pl.CostEstimate(
        flops=2 * B * num_outputs * S0,
        transcendentals=0,
        bytes_accessed=(1 + num_outputs) * B * S0 * itemsize)

    if S0 % LANE == 0:
        # Lane-dense main path: flatten each batch volume to (R0, 128) rows.
        R0 = S0 // LANE
        x_in = x.reshape(B, R0, LANE)
        rt = vmem_block_budget // ((1 + num_outputs) * 2 * LANE * itemsize)
        rt = max(sub, min(rt, R0))
        if rt < R0:
            rt = max(sub, (rt // sub) * sub)      # sublane-aligned row tiles
        n_blk = pl.cdiv(R0, rt)                   # last block may be partial
        rows, lanes_pad = rt, LANE
        in_block = (None, rt, LANE)
        out_block = (None, num_outputs, rt, LANE)
        out_shape = (B, num_outputs, R0, LANE)
    else:
        # Ragged fallback (S0 % 128 != 0): no wrapper-side pad or slice pass.
        # Keep the trailing H*W plane intact (full-dim lane block is exempt
        # from the 128-divisibility rule) and tile over the fused C*D axis.
        Q, T = C * D, H * W
        x_in = x.reshape(B, Q, T)
        t_lanes = pl.cdiv(T, LANE) * LANE         # lane-padded VMEM row width
        row_vmem = t_lanes * itemsize
        tq = vmem_block_budget // ((1 + num_outputs) * 2 * row_vmem)
        if tq >= Q or Q <= sub:
            tq = Q                                # full dim: exempt
        else:
            tq = max(sub, (tq // sub) * sub)
        n_blk = pl.cdiv(Q, tq)
        rows, lanes_pad = tq, t_lanes
        in_block = (None, tq, T)
        out_block = (None, num_outputs, tq, T)
        out_shape = (B, num_outputs, Q, T)

    # VMEM actually needed for the double-buffered in + out blocks (+ headroom).
    rows_pad = pl.cdiv(rows, sub) * sub
    need = (1 + num_outputs) * 2 * rows_pad * lanes_pad * itemsize
    vmem_limit = int(max(32 * 2**20, min(need + (4 << 20), 60 * 2**20)))

    out = pl.pallas_call(
        _finalc_kernel,
        out_shape=jax.ShapeDtypeStruct(out_shape, dtype),
        grid_spec=pltpu.PrefetchScalarGridSpec(
            num_scalar_prefetch=1,                      # e_flat -> SMEM
            grid=(B, n_blk),
            in_specs=[pl.BlockSpec(in_block, lambda b, r, e_s: (b, r, 0))],
            out_specs=pl.BlockSpec(out_block, lambda b, r, e_s: (b, 0, r, 0)),
        ),
        compiler_params=pltpu.CompilerParams(
            dimension_semantics=("parallel", "parallel"),
            vmem_limit_bytes=vmem_limit),
        cost_estimate=cost,
    )(e_flat, x_in)

    # Contiguous reshape (no data movement): (B, n, C*D*H*W) -> (B, n*C, D, H, W)
    return out.reshape(B, num_outputs * C, D, H, W)


def _reference(x, z_prjs, w_lin, b_lin, num_outputs):
    # Pure-JAX mirror of the PyTorch forward (f32).
    xf = x.astype(jnp.float32)
    z = z_prjs.astype(jnp.float32)
    e = (z * jax.nn.sigmoid(z)) @ w_lin.astype(jnp.float32).T \
        + b_lin.astype(jnp.float32)
    scale = e[:, 0][:, None, None, None, None]
    shift = e[:, 1][:, None, None, None, None]
    x_rep = jnp.tile(xf, (1, num_outputs, 1, 1, 1))
    return x_rep * scale + shift


if __name__ == "__main__":
    key = jax.random.PRNGKey(0)
    k1, k2, k3, k4, k5 = jax.random.split(key, 5)

    # Deterministic nn.Linear(5, 2)-style init (uniform in +-1/sqrt(fan_in)).
    bound = 1.0 / jnp.sqrt(5.0)
    w_lin = jax.random.uniform(k3, (2, 5), minval=-bound, maxval=bound,
                               dtype=jnp.float32)
    b_lin = jax.random.uniform(k4, (2,), minval=-bound, maxval=bound,
                               dtype=jnp.float32)

    # Case 1: num_outputs=1, f32, per-batch volume divides 128 exactly.
    B, C, D, H, W = 2, 1, 4, 16, 16
    x1 = jax.random.normal(k1, (B, C, D, H, W), dtype=jnp.float32)
    z1 = jax.random.normal(k2, (B, 5), dtype=jnp.float32)
    o1 = jax.block_until_ready(finalc_embedding(x1, z1, w_lin, b_lin,
                                                num_outputs=1))
    r1 = _reference(x1, z1, w_lin, b_lin, 1)
    assert o1.shape == r1.shape
    assert jnp.allclose(o1, r1, atol=1e-5, rtol=1e-5)

    # Case 2: num_outputs=2 folded into the output block + forced small tile
    # budget so the row axis is tiled and the last row block is partial.
    B, C, D, H, W = 2, 2, 10, 32, 40          # 25600 elems -> 200 rows of 128
    x2 = jax.random.normal(k2, (B, C, D, H, W), dtype=jnp.float32)
    z2 = jax.random.normal(k5, (B, 5), dtype=jnp.float32)
    o2 = jax.block_until_ready(finalc_embedding(x2, z2, w_lin, b_lin,
                                                num_outputs=2,
                                                vmem_block_budget=256 * 1024))
    r2 = _reference(x2, z2, w_lin, b_lin, 2)
    assert o2.shape == r2.shape
    assert jnp.allclose(o2, r2, atol=1e-5, rtol=1e-5)

    # Case 3: bf16 streaming + ragged volume (105 elems/batch, no pad pass).
    B, C, D, H, W = 2, 1, 3, 5, 7
    x3 = jax.random.normal(k1, (B, C, D, H, W),
                           dtype=jnp.float32).astype(jnp.bfloat16)
    z3 = jax.random.normal(k2, (B, 5), dtype=jnp.float32)
    o3 = jax.block_until_ready(finalc_embedding(x3, z3, w_lin, b_lin,
                                                num_outputs=1))
    r3 = _reference(x3, z3, w_lin, b_lin, 1)
    assert o3.dtype == jnp.bfloat16 and o3.shape == r3.shape
    assert jnp.allclose(o3.astype(jnp.float32), r3, atol=3e-2, rtol=3e-2)

    # Case 4: ragged + num_outputs=2 + forced tiling over the fused C*D axis.
    B, C, D, H, W = 2, 4, 6, 10, 10           # 2400 elems/batch, 2400 % 128 != 0
    x4 = jax.random.normal(k5, (B, C, D, H, W), dtype=jnp.float32)
    z4 = jax.random.normal(k1, (B, 5), dtype=jnp.float32)
    o4 = jax.block_until_ready(finalc_embedding(x4, z4, w_lin, b_lin,
                                                num_outputs=2,
                                                vmem_block_budget=16 * 1024))
    r4 = _reference(x4, z4, w_lin, b_lin, 2)
    assert o4.shape == r4.shape
    assert jnp.allclose(o4, r4, atol=1e-5, rtol=1e-5)

    print("KERNEL_OK")
</pallas_src>

<mosaic_0001>
module attributes {stable_mosaic.version = 11 : i64} {
  func.func @_finalc_kernel(%arg0: i32, %arg1: i32, %arg2: memref<4xf32, #tpu.memory_space<smem>>, %arg3: memref<1x8x128xf32, #tpu.memory_space<vmem>>, %arg4: memref<1x1x8x128xf32, #tpu.memory_space<vmem>>) attributes {dimension_semantics = [#tpu.dimension_semantics<parallel>, #tpu.dimension_semantics<parallel>], iteration_bounds = array<i64: 2, 1>, scalar_prefetch = 1 : i64, scratch_operands = 0 : i64, tpu.core_type = #tpu.core_type<tc>, window_params = [{transform_indices = @transform_0, window_bounds = array<i64: 1, 8, 128>}, {transform_indices = @transform_1, window_bounds = array<i64: 1, 1, 8, 128>}]} {
    %c2_i32 = arith.constant 2 : i32
    %0 = arith.muli %c2_i32, %arg0 : i32
    %1 = arith.index_cast %0 : i32 to index
    %2 = memref.load %arg2[%1] : memref<4xf32, #tpu.memory_space<smem>>
    %c2_i32_0 = arith.constant 2 : i32
    %3 = arith.muli %c2_i32_0, %arg0 : i32
    %c1_i32 = arith.constant 1 : i32
    %4 = arith.addi %3, %c1_i32 : i32
    %5 = arith.index_cast %4 : i32 to index
    %6 = memref.load %arg2[%5] : memref<4xf32, #tpu.memory_space<smem>>
    %c0 = arith.constant 0 : index
    %c0_1 = arith.constant 0 : index
    %c0_2 = arith.constant 0 : index
    %7 = vector.load %arg3[%c0, %c0_1, %c0_2] : memref<1x8x128xf32, #tpu.memory_space<vmem>>, vector<1x8x128xf32>
    %8 = vector.shape_cast %7 : vector<1x8x128xf32> to vector<8x128xf32>
    %9 = vector.broadcast %2 : f32 to vector<8x128xf32>
    %10 = arith.mulf %8, %9 : vector<8x128xf32>
    %11 = vector.broadcast %6 : f32 to vector<8x128xf32>
    %12 = arith.addf %10, %11 : vector<8x128xf32>
    %c0_3 = arith.constant 0 : index
    %c0_4 = arith.constant 0 : index
    %c0_5 = arith.constant 0 : index
    %c0_6 = arith.constant 0 : index
    %13 = vector.load %arg4[%c0_3, %c0_4, %c0_5, %c0_6] : memref<1x1x8x128xf32, #tpu.memory_space<vmem>>, vector<1x1x8x128xf32>
    %14 = vector.shape_cast %13 : vector<1x1x8x128xf32> to vector<8x128xf32>
    %15 = vector.shape_cast %12 : vector<8x128xf32> to vector<1x1x8x128xf32>
    tpu.vector_store %arg4[%c0_3, %c0_4, %c0_5, %c0_6], %15 {strides = array<i32>} : memref<1x1x8x128xf32, #tpu.memory_space<vmem>>, vector<1x1x8x128xf32>,
    return
  }
  func.func @transform_0(%arg0: i32, %arg1: i32, %arg2: memref<4xf32, #tpu.memory_space<smem>>) -> (i32, i32, i32) {
    %c0_i32 = arith.constant 0 : i32
    %c0_i32_0 = arith.constant 0 : i32
    return %arg0, %arg1, %c0_i32 : i32, i32, i32
  }
  func.func @transform_1(%arg0: i32, %arg1: i32, %arg2: memref<4xf32, #tpu.memory_space<smem>>) -> (i32, i32, i32, i32) {
    %c0_i32 = arith.constant 0 : i32
    %c0_i32_0 = arith.constant 0 : i32
    %c0_i32_1 = arith.constant 0 : i32
    return %arg0, %c0_i32, %arg1, %c0_i32_0 : i32, i32, i32, i32
  }
}

</mosaic_0001>

<bundles_post_ra>
// kernel: tpu_custom_call.1
= control target key start
LH: loop header
LB: loop body
LE: loop exit
PB: predicated region body
PF: predicated region fallthrough
CT: control target
= control target key end

     0   :  { %s665_s0 = inlined_call_operand.hbm [shape: f32[4], index: 0, kind: input, shape index: {}]   ;;  %s666_s1 = inlined_call_operand.hbm [shape: f32[2,8,128], index: 1, kind: input, shape index: {}]   ;;  %s667_s2 = inlined_call_operand.hbm [shape: f32[2,1,8,128], index: 2, kind: output, shape index: {}]  }
   0x1   :  { %s336_s11 = scalar_lea.hbm %s665_s0, 16 }
   0x2   :  { %p337_p0 = scmp.ne.s32.totalorder %s665_s0, %s336_s11  ;;  %p340_p1 = scmp.lt.u32.totalorder %s336_s11, %s665_s0 }
   0x4   :  { %p342_p2 = pnand %p340_p1, %p337_p0 }
   0x6   :  { %345 = shalt.err (!%p342_p2)  }
   0x7   :  { %s462_s16 = smov [#allocation3]  }
   0x8   :  { %8 = dma.hbm_to_smem %s665_s0, 16, %s462_s16, [#allocation2] }
   0x9   :  { %428 = dma.done.wait [#allocation2], 16 }
   0xa   :  { %429 = vsyncadd [#allocation2], 4294967280 }
   0xb   :  { %10 = sfence }
   0xc   :  { %11 = vsyncpa [#allocation5], 0 }
   0xd   :  { %13 = vsyncpa [#allocation5 + $0x1], 0 }
   0xe   :  { %14 = vsyncpa [#allocation6], 0 }
   0xf   :  { %16 = vsyncpa [#allocation6 + $0x1], 0  ;;  %s492_s19 = smov 0   ;;  %s494_s20 = smov 0  }
  0x10   :  { %s496_s21 = smov 0   ;;  %s498_s22 = smov 0  }
  0x11   :  { %s500_s23 = smov 0   ;;  %s502_s24 = smov 0  }
  0x12 LB: > { %s259_s0 = sadd.s32 4294967295, %s460_s24   ;;  %s260_s25 = sadd.s32 4294967294, %s460_s24   ;;  %s460_s24 = sphi %s502_s24, %s22_s24   ;;  %s456_s23 = sphi %s500_s23, %s683_s23   ;;  %s452_s22 = sphi %s498_s22, %s682_s22   ;;  %s448_s21 = sphi %s496_s21, %s681_s21   ;;  %s444_s20 = sphi %s494_s20, %s680_s20   ;;  %s440_s19 = sphi %s492_s19, %s679_s19  }
  0x13   : > { %s34_s26 = sadd.s32 1, %s456_s23  ;;  %s43_s27 = sadd.s32 1, %s448_s21 }
  0x14   : > { %p36_p3 = scmp.ge.s32.totalorder %s34_s26, 2  ;;  %p50_p4 = scmp.ne.s32.totalorder %s448_s21, %s444_s20 }
  0x15   : > { %p51_p5 = scmp.eq.s32.totalorder %s460_s24, 0  ;;  %p56_p6 = scmp.ne.s32.totalorder %s444_s20, %s440_s19 }
  0x16   : > { %s685_s26 = smov (%p36_p3, %s34_s26), 0  ;;  %p57_p8 = scmp.eq.s32.totalorder %s259_s0, 0 }
  0x17   : > { %p533_p7 = por %p51_p5, %p50_p4  ;;  %s38_s29 = ssub.s32 %s456_s23, %s685_s26 }
  0x18   : > { %p82_p9 = scmp.eq.s32.totalorder %s259_s0, 1  ;;  %p41_p10 = scmp.eq.s32.totalorder %s38_s29, 0 }
  0x19   : > { %p539_p11 = por %p57_p8, %p56_p6  ;;  %p88_p13 = scmp.eq.s32.totalorder %s260_s25, 1 }
  0x1a   : > { %p543_p12 = por %p82_p9, %p50_p4  ;;  %p285_p2 = scmp.lt.s32.totalorder %s460_s24, 2 }
  0x1b   : > { %s548_s4 = scalar_select %p41_p10, %s448_s21, %s43_s27  }
  0x1c   : > { %s671_s3 = scalar_select %p543_p12, 1, 0 }
  0x1d   : > { %p550_p0 = por %p88_p13, %p56_p6  ;;  %s108_s6 = sand.u32 1, %s448_s21  }
  0x1e   : > { %s263_s7 = sshll.u32 %s108_s6, 3  ;;  %s264_s8 = sshll.u32 %s456_s23, 7 }
  0x1f   : > { %s672_s5 = scalar_select %p550_p0, 1, 0 }
  0x20   : > { %s561_s11 = scalar_lea.hbm %s666_s1, %s264_s8  ;;  %s112_s12 = scalar_lea.vmem [#allocation4], %s263_s7 }
  0x21   : > { %s120_s13 = sshll.u32 %s112_s12, 4  ;;  %p567_p3 = pnand %p285_p2, %p533_p7  ;;  %s563_s13 = int_to_ptr.vmem [resolvable:$true] %s120_s13 }
  0x22   : > { %s109_s15 = scalar_lea.sflag [#allocation5], %s108_s6  ;;  %s346_s16 = scalar_lea.hbm %s561_s11, 128 }
  0x23   : > { %p347_p6 = scmp.ne.s32.totalorder %s561_s11, %s346_s16  ;;  %p348_p8 = pneg %p567_p3 }
  0x24   : > { %s351_s0 = scalar_lea.hbm %s666_s1, 256  ;;  %p352_p7 = scmp.lt.u32.totalorder %s561_s11, %s666_s1 }
  0x25   : > { %p349_p9 = pnand %p348_p8, %p347_p6  ;;  %p353_p13 = scmp.lt.u32.totalorder %s351_s0, %s346_s16 }
  0x26   : > { %p355_p1 = scmp.lt.u32.totalorder %s346_s16, %s561_s11 }
  0x27   : > { %p350_p10 = pneg %p349_p9  ;;  %p354_p2 = por %p353_p13, %p352_p7 }
  0x29   : > { %p356_p4 = por %p355_p1, %p354_p2 }
  0x2b   : > { %p357_p5 = pnand %p356_p4, %p350_p10 }
  0x2d   : > { %360 = shalt.err (!%p357_p5)
}
  0x2e   : > { %s361_s28 = scalar_lea.vmem %s563_s13, 128  ;;  %s463_s29 = smov [#allocation4]  }
  0x2f   : > { %p362_p6 = scmp.ne.s32.totalorder %s563_s13, %s361_s28  ;;  %s366_s6 = sshll.u32 %s463_s29, 4  ;;  %s367_s6 = int_to_ptr.vmem [resolvable:$false] %s366_s6 }
  0x30   : > { %s368_s7 = scalar_lea.vmem %s367_s6, 256  ;;  %p369_p12 = scmp.lt.s32.totalorder %s563_s13, %s367_s6 }
  0x31   : > { %p364_p9 = pnand %p362_p6, %p348_p8  ;;  %p370_p7 = scmp.lt.s32.totalorder %s368_s7, %s361_s28 }
  0x33   : > { %p365_p0 = pneg %p364_p9  ;;  %p371_p13 = por %p370_p7, %p369_p12 }
  0x35   : > { %p372_p1 = pnand %p371_p13, %p365_p0 }
  0x37   : > { %375 = shalt.err (!%p372_p1)
}
  0x38   : > { %280 = dma.hbm_to_vmem [thread:$0]  (!%p567_p3), %s561_s11, 128, %s563_s13, %s109_s15  }
  0x39   : > { %p674_p4 = scmp.lt.s32.totalorder %s460_s24, 3  ;;  %p675_p5 = scmp.ge.s32.totalorder %s460_s24, 1 }
  0x3b   : > { %p126_p8 = pnand %p675_p5, %p674_p4 }
  0x3c   : > { %s603_s8 = sand.u32 (!%p126_p8), 1, %s444_s20  }
  0x3d   : > { %129 = sbr.rel (%p126_p8) target bundleno = 97 (0x61), region = 24  ;;  %s266_s9 = sshll.u32 (!%p126_p8), %s603_s8, 3 }
  0x3e   : > { %s132_s10 = scalar_lea.sflag (!%p126_p8), [#allocation5], %s603_s8  ;;  %s135_s12 = scalar_lea.vmem (!%p126_p8), [#allocation4], %s266_s9 }
  0x44   : > { %431 = dma.done.wait (%p539_p11), %s132_s10, 128  }
  0x45   : > { %433 = vsyncadd (%p539_p11), %s132_s10, 4294967168  ;;  %s268_s11 = sshll.u32 %s452_s22, 1  ;;  %s153_s16 = scalar_lea.vmem [#allocation7], %s266_s9  ;;  %v158_v0 = vld [vmem:[%s135_s12] sm:$0xff] }
  0x46   : > { %s155_s13 = sld [smem:[#allocation3 + %s268_s11]]  ;;  %s156_s14 = sadd.s32 1, %s268_s11 }
  0x47   : > { %s157_s15 = sld [smem:[#allocation3 + %s156_s14]]  ;;  %s179_s17 = sshll.u32 %s153_s16, 4  ;;  %s613_s17 = int_to_ptr.vmem [resolvable:$true] %s179_s17 }
  0x48   : > { %s270_s18 = sshll.u32 %s452_s22, 7  ;;  %s165_s27 = scalar_lea.sflag [#allocation6], %s603_s8 }
  0x49   : > { %s618_s25 = scalar_lea.hbm %s667_s2, %s270_s18  ;;  %s376_s28 = scalar_lea.vmem %s613_s17, 128 }
  0x4a   : > { %p377_p11 = scmp.ne.s32.totalorder %s613_s17, %s376_s28  ;;  %p676_p12 = scmp.ne.s32.totalorder %s671_s3, 0 }
  0x4b   : > { %s464_s22 = smov [#allocation7]  }
  0x4c   : > { %v159_v1 = vstv %s155_s13  ;;  %p378_p0 = pnand %p377_p11, %p676_p12  ;;  %s380_s29 = sshll.u32 %s464_s22, 4  ;;  %s381_s29 = int_to_ptr.vmem [resolvable:$false] %s380_s29 }
  0x4d   : > { %v160_v2 = vmul.f32 %v159_v1, %v158_v0  ;;  %v161_v3 = vstv %s157_s15  ;;  %s382_s6 = scalar_lea.vmem %s381_s29, 256  ;;  %p383_p10 = scmp.lt.s32.totalorder %s613_s17, %s381_s29 }
  0x4e   : > { %p379_p3 = pneg %p378_p0  ;;  %p384_p2 = scmp.lt.s32.totalorder %s382_s6, %s376_s28 }
  0x4f   : > { %v162_v4 = vadd.f32 %v161_v3, %v160_v2 }
  0x50   : > { %p385_p6 = por %p384_p2, %p383_p10 }
  0x51   : > { %163 = vst [vmem:[%s153_s16] sm:$0xff] %v162_v4 }
  0x52   : > { %p386_p9 = pnand %p385_p6, %p379_p3 }
  0x54   : > { %389 = shalt.err (!%p386_p9)
}
  0x55   : > { %s390_s7 = scalar_lea.hbm %s618_s25, 128  ;;  %s394_s10 = scalar_lea.hbm %s667_s2, 256 }
  0x56   : > { %p391_p7 = scmp.ne.s32.totalorder %s618_s25, %s390_s7  ;;  %p395_p4 = scmp.lt.u32.totalorder %s618_s25, %s667_s2 }
  0x57   : > { %p396_p5 = scmp.lt.u32.totalorder %s394_s10, %s390_s7  ;;  %p398_p11 = scmp.lt.u32.totalorder %s390_s7, %s618_s25 }
  0x58   : > { %p392_p13 = pnand %p391_p7, %p676_p12 }
  0x59   : > { %p397_p8 = por %p396_p5, %p395_p4 }
  0x5a   : > { %p393_p1 = pneg %p392_p13 }
  0x5b   : > { %p399_p0 = por %p398_p11, %p397_p8 }
  0x5d   : > { %p400_p3 = pnand %p399_p0, %p393_p1 }
  0x5f   : > { %403 = shalt.err (!%p400_p3)
}
  0x60   : > { %275 = dma.vmem_to_hbm [thread:$0]  (%p676_p12), %s613_s17, 128, %s618_s25, %s165_s27  }
  0x61 PF: > { %s191_s13 = sand.u32 1, %s440_s19   ;;  %p677_p10 = scmp.ne.s32.totalorder %s672_s5, 0 }
  0x62   : > { %p678_p2 = scmp.ge.s32.totalorder %s460_s24, 2  ;;  %s192_s14 = scalar_lea.sflag [#allocation6], %s191_s13 }
  0x64   : > { %p282_p6 = pnand %p678_p2, %p677_p10 }
  0x66   : > { %435 = dma.done.wait (!%p282_p6), %s192_s14, 128  }
  0x67   : > { %437 = vsyncadd (!%p282_p6), %s192_s14, 4294967168  ;;  %s22_s24 = sadd.s32 1, %s460_s24   ;;  %s679_s19 = smov %s444_s20 }
  0x68   : > { %p19_p9 = scmp.ge.s32.totalorder %s22_s24, 4   ;;  %s680_s20 = smov %s448_s21 }
  0x69   : > { %s681_s21 = smov %s548_s4  ;;  %s682_s22 = smov %s456_s23 }
  0x6a   : > { %s683_s23 = smov %s685_s26  ;;  %21 = sbr.rel (!%p19_p9) target bundleno = 18 (0x12), region = 69 }
  0x71   :  { %197 = vsyncpa [#allocation5], 1 }
  0x72   :  { %199 = vsyncpa [#allocation5 + $0x1], 1 }
  0x73   :  { %200 = vsyncpa [#allocation6], 1 }
  0x74   :  { %202 = vsyncpa [#allocation6 + $0x1], 1 }

</bundles_post_ra>
